<compile_context>
chip_gen: v6e
topology: v6e:2x2x1
jax: 0.10.0
libtpu: 0.0.40
codegen_flags: <defaults>
</compile_context>

<pallas_src>
import jax
import jax.numpy as jnp
from jax.experimental import pallas as pl
from jax.experimental.pallas import tpu as pltpu


def _siglip_neglogsig_kernel(scale_ref, bias_ref, img_ref, txt_ref, out_ref):
    """Accumulates sum_j logsigmoid(-logits[:, j]) folded to a (tm, W) block."""
    j = pl.program_id(1)  # text tile index (reduction axis, innermost)

    # bf16 (or f32) MXU matmul, f32 accumulation; NN contraction, no transpose.
    dot = jnp.dot(img_ref[...], txt_ref[...],
                  preferred_element_type=jnp.float32)

    # Scale / bias applied post-matmul in f32 (scale NOT folded into bf16 tiles).
    logits = dot * scale_ref[0] + bias_ref[0]

    # Numerically stable logsigmoid(-x) = -max(x, 0) - log1p(exp(-|x|)).
    nls = -jnp.maximum(logits, 0.0) - jnp.log1p(jnp.exp(-jnp.abs(logits)))

    # Fold (tm, tn) -> (tm, W) with lane-aligned static slices (W = 128 when
    # tn >= 128), keeping the output store unmasked / lane-dense.
    w = out_ref.shape[1]
    tn = nls.shape[1]
    acc = nls[:, 0:w]
    for c in range(1, tn // w):
        acc = acc + nls[:, c * w:(c + 1) * w]

    @pl.when(j == 0)
    def _():
        out_ref[...] = acc          # direct store, no zero-init + reload

    @pl.when(j > 0)
    def _():
        out_ref[...] += acc


def siglip_loss(image_features, text_features, logit_scale, logit_bias,
                *, tm=512, tn=512, matmul_dtype=jnp.bfloat16):
    n, d = image_features.shape
    assert text_features.shape == (n, d)

    tm = min(tm, n)
    tn = min(tn, n)
    # TODO(synk): ragged batches (n not divisible by the tiles) are not masked.
    assert n % tm == 0 and n % tn == 0
    nr, nc = n // tm, n // tn

    # Lane-dense accumulator width.
    w = 128 if tn >= 128 else tn
    assert tn % w == 0

    f32 = jnp.float32
    scale_f32 = jnp.asarray(logit_scale, f32)
    bias_f32 = jnp.asarray(logit_bias, f32)

    # Cast once in the wrapper so the streamed HBM traffic is halved too.
    img_mm = image_features.astype(matmul_dtype)
    txt_mm = text_features.astype(matmul_dtype)
    # One-time transpose -> per-step (tm, d) x (d, tn) NN matmul on the MXU.
    txt_t = txt_mm.T  # (d, n)

    # trace(logits) = scale * sum(img ⊙ txt) + n * bias   (fused in XLA).
    trace = (scale_f32 * jnp.sum(img_mm.astype(f32) * txt_mm.astype(f32))
             + f32(n) * bias_f32)

    scale = scale_f32.reshape(1)
    bias = bias_f32.reshape(1)

    # Explicit VMEM budget: double-buffered image + text tiles, resident output
    # block, plus headroom; capped at 48 MiB so it also fits v7x's 64 MiB VMEM.
    itemsize = jnp.dtype(matmul_dtype).itemsize
    est_vmem = 2 * (tm * d + tn * d) * itemsize + 2 * tm * w * 4
    vmem_limit = int(min(max(2 * est_vmem + (8 << 20), 32 << 20), 48 << 20))

    partials = pl.pallas_call(
        _siglip_neglogsig_kernel,
        out_shape=jax.ShapeDtypeStruct((nr * tm, w), jnp.float32),
        grid_spec=pltpu.PrefetchScalarGridSpec(
            num_scalar_prefetch=0,
            grid=(nr, nc),
            in_specs=[
                pl.BlockSpec(memory_space=pltpu.MemorySpace.SMEM),  # logit_scale
                pl.BlockSpec(memory_space=pltpu.MemorySpace.SMEM),  # logit_bias
                pl.BlockSpec((tm, d), lambda i, j: (i, 0)),         # image tile
                pl.BlockSpec((d, tn), lambda i, j: (0, j)),         # text.T tile
            ],
            out_specs=pl.BlockSpec((tm, w), lambda i, j: (i, 0)),   # row partials
        ),
        compiler_params=pltpu.CompilerParams(
            # Row tiles independent (megacore on v7x); text axis is a reduction.
            dimension_semantics=("parallel", "arbitrary"),
            vmem_limit_bytes=vmem_limit,
        ),
    )(scale, bias, img_mm, txt_t)

    # loss = -(sum_ij logsigmoid(-logits_ij) + trace(logits)) / n
    return -(jnp.sum(partials) + trace) / f32(n)


def siglip_loss_ref(image_features, text_features, logit_scale, logit_bias):
    n = image_features.shape[0]
    logits = logit_scale * jnp.dot(image_features, text_features.T,
                                   precision=jax.lax.Precision.HIGHEST)
    logits = logits + logit_bias
    labels = 2.0 * jnp.eye(n, dtype=logits.dtype) - 1.0
    return -jnp.sum(jax.nn.log_sigmoid(labels * logits)) / n


if __name__ == "__main__":
    N, D = 16, 32  # batch of 16 paired image/text embeddings, hidden=32
    key = jax.random.PRNGKey(0)
    k_img, k_txt = jax.random.split(key)

    # L2-normalized features, as SigLIP expects.
    img = jax.random.normal(k_img, (N, D), jnp.float32)
    txt = jax.random.normal(k_txt, (N, D), jnp.float32)
    img = img / jnp.linalg.norm(img, axis=-1, keepdims=True)
    txt = txt / jnp.linalg.norm(txt, axis=-1, keepdims=True)

    # SigLIP defaults: scale ~ exp(log 10) = 10, bias ~ -10.
    logit_scale = jnp.float32(10.0)
    logit_bias = jnp.float32(-10.0)

    loss_bf16 = siglip_loss(img, txt, logit_scale, logit_bias)           # default bf16 MXU
    loss_f32 = siglip_loss(img, txt, logit_scale, logit_bias,
                           matmul_dtype=jnp.float32)                     # strict check path
    jax.block_until_ready((loss_bf16, loss_f32))

    ref_f32 = siglip_loss_ref(img, txt, logit_scale, logit_bias)
    img_b = img.astype(jnp.bfloat16).astype(jnp.float32)
    txt_b = txt.astype(jnp.bfloat16).astype(jnp.float32)
    ref_bf16 = siglip_loss_ref(img_b, txt_b, logit_scale, logit_bias)

    # f32 kernel vs f32 reference (tight).
    assert jnp.allclose(loss_f32, ref_f32, rtol=1e-3, atol=1e-3), (loss_f32, ref_f32)
    # bf16 kernel vs bf16-consistent reference (same inputs -> tight).
    assert jnp.allclose(loss_bf16, ref_bf16, rtol=1e-3, atol=1e-3), (loss_bf16, ref_bf16)
    # bf16 kernel vs exact f32 reference (looser: bf16 feature rounding).
    assert jnp.allclose(loss_bf16, ref_f32, rtol=2e-2, atol=2e-2), (loss_bf16, ref_f32)

    print("KERNEL_OK")
</pallas_src>

<mosaic_0001>
module attributes {stable_mosaic.version = 11 : i64} {
  func.func @_siglip_neglogsig_kernel(%arg0: i32, %arg1: i32, %arg2: memref<1xf32, #tpu.memory_space<smem>>, %arg3: memref<1xf32, #tpu.memory_space<smem>>, %arg4: memref<16x32xbf16, #tpu.memory_space<vmem>>, %arg5: memref<32x16xbf16, #tpu.memory_space<vmem>>, %arg6: memref<16x16xf32, #tpu.memory_space<vmem>>) attributes {dimension_semantics = [#tpu.dimension_semantics<parallel>, #tpu.dimension_semantics<arbitrary>], iteration_bounds = array<i64: 1, 1>, scalar_prefetch = 0 : i64, scratch_operands = 0 : i64, tpu.core_type = #tpu.core_type<tc>, window_params = [{transform_indices = @transform_0, window_bounds = array<i64: 1>}, {transform_indices = @transform_1, window_bounds = array<i64: 1>}, {transform_indices = @transform_2, window_bounds = array<i64: 16, 32>}, {transform_indices = @transform_3, window_bounds = array<i64: 32, 16>}, {transform_indices = @transform_4, window_bounds = array<i64: 16, 16>}]} {
    %c0 = arith.constant 0 : index
    %c0_0 = arith.constant 0 : index
    %0 = vector.load %arg4[%c0, %c0_0] : memref<16x32xbf16, #tpu.memory_space<vmem>>, vector<16x32xbf16>
    %c0_1 = arith.constant 0 : index
    %c0_2 = arith.constant 0 : index
    %1 = vector.load %arg5[%c0_1, %c0_2] : memref<32x16xbf16, #tpu.memory_space<vmem>>, vector<32x16xbf16>
    %cst = arith.constant dense<0.000000e+00> : vector<16x16xf32>
    %2 = tpu.matmul %0, %1, %cst {dimension_numbers = #tpu.dot_dimension_numbers<[1], [0], [0], [1], [0, 0, 1, 1], [], []>} : vector<16x32xbf16>, vector<32x16xbf16>, vector<16x16xf32> -> vector<16x16xf32>
    %c0_3 = arith.constant 0 : index
    %3 = memref.load %arg2[%c0_3] : memref<1xf32, #tpu.memory_space<smem>>
    %4 = vector.broadcast %3 : f32 to vector<16x16xf32>
    %5 = arith.mulf %2, %4 : vector<16x16xf32>
    %c0_4 = arith.constant 0 : index
    %6 = memref.load %arg3[%c0_4] : memref<1xf32, #tpu.memory_space<smem>>
    %7 = vector.broadcast %6 : f32 to vector<16x16xf32>
    %8 = arith.addf %5, %7 : vector<16x16xf32>
    %cst_5 = arith.constant 0.000000e+00 : f32
    %9 = vector.broadcast %cst_5 : f32 to vector<16x16xf32>
    %10 = arith.maximumf %8, %9 : vector<16x16xf32>
    %cst_6 = arith.constant 0.000000e+00 : f32
    %11 = vector.broadcast %cst_6 : f32 to vector<16x16xf32>
    %12 = arith.subf %11, %10 : vector<16x16xf32>
    %13 = math.absf %8 : vector<16x16xf32>
    %cst_7 = arith.constant 0.000000e+00 : f32
    %14 = vector.broadcast %cst_7 : f32 to vector<16x16xf32>
    %15 = arith.subf %14, %13 : vector<16x16xf32>
    %16 = math.exp %15 : vector<16x16xf32>
    %17 = math.log1p %16 : vector<16x16xf32>
    %18 = arith.subf %12, %17 : vector<16x16xf32>
    %c0_i32 = arith.constant 0 : i32
    %19 = arith.cmpi eq, %arg1, %c0_i32 : i32
    %20 = arith.extui %19 : i1 to i32
    %c0_i32_8 = arith.constant 0 : i32
    %21 = arith.cmpi ne, %20, %c0_i32_8 : i32
    scf.if %21 {
      %c0_11 = arith.constant 0 : index
      %c0_12 = arith.constant 0 : index
      %25 = vector.load %arg6[%c0_11, %c0_12] : memref<16x16xf32, #tpu.memory_space<vmem>>, vector<16x16xf32>
      tpu.vector_store %arg6[%c0_11, %c0_12], %18 {strides = array<i32>} : memref<16x16xf32, #tpu.memory_space<vmem>>, vector<16x16xf32>,
    } else {
    }
    %c0_i32_9 = arith.constant 0 : i32
    %22 = arith.cmpi sgt, %arg1, %c0_i32_9 : i32
    %23 = arith.extui %22 : i1 to i32
    %c0_i32_10 = arith.constant 0 : i32
    %24 = arith.cmpi ne, %23, %c0_i32_10 : i32
    scf.if %24 {
      %c0_11 = arith.constant 0 : index
      %c0_12 = arith.constant 0 : index
      %25 = vector.load %arg6[%c0_11, %c0_12] : memref<16x16xf32, #tpu.memory_space<vmem>>, vector<16x16xf32>
      %26 = arith.addf %25, %18 : vector<16x16xf32>
      %c0_13 = arith.constant 0 : index
      %c0_14 = arith.constant 0 : index
      %27 = vector.load %arg6[%c0_13, %c0_14] : memref<16x16xf32, #tpu.memory_space<vmem>>, vector<16x16xf32>
      tpu.vector_store %arg6[%c0_13, %c0_14], %26 {strides = array<i32>} : memref<16x16xf32, #tpu.memory_space<vmem>>, vector<16x16xf32>,
    } else {
    }
    return
  }
  func.func @transform_0(%arg0: i32, %arg1: i32) -> i32 {
    %c0_i32 = arith.constant 0 : i32
    %c0_i32_0 = arith.constant 0 : i32
    return %c0_i32 : i32
  }
  func.func @transform_1(%arg0: i32, %arg1: i32) -> i32 {
    %c0_i32 = arith.constant 0 : i32
    %c0_i32_0 = arith.constant 0 : i32
    return %c0_i32 : i32
  }
  func.func @transform_2(%arg0: i32, %arg1: i32) -> (i32, i32) {
    %c0_i32 = arith.constant 0 : i32
    %c0_i32_0 = arith.constant 0 : i32
    return %arg0, %c0_i32 : i32, i32
  }
  func.func @transform_3(%arg0: i32, %arg1: i32) -> (i32, i32) {
    %c0_i32 = arith.constant 0 : i32
    %c0_i32_0 = arith.constant 0 : i32
    return %c0_i32, %arg1 : i32, i32
  }
  func.func @transform_4(%arg0: i32, %arg1: i32) -> (i32, i32) {
    %c0_i32 = arith.constant 0 : i32
    %c0_i32_0 = arith.constant 0 : i32
    return %arg0, %c0_i32 : i32, i32
  }
}

</mosaic_0001>

<bundles_post_ra>
// kernel: tpu_custom_call.1
= control target key start
LH: loop header
LB: loop body
LE: loop exit
PB: predicated region body
PF: predicated region fallthrough
CT: control target
= control target key end

     0   :  { %v216_v1 = vmov 0.0   ;;  %vm217_vm0 = vmmov 0   ;;  %s264_s0 = inlined_call_operand.<no memory space> [shape: f32[1], index: 0, kind: input, shape index: {}]   ;;  %s265_s1 = inlined_call_operand.<no memory space> [shape: f32[1], index: 1, kind: input, shape index: {}]   ;;  %s266_s2 = inlined_call_operand.vmem [shape: bf16[16,32], index: 2, kind: input, shape index: {}]   ;;  %s267_s3 = inlined_call_operand.vmem [shape: bf16[32,16], index: 3, kind: input, shape index: {}]   ;;  %s268_s4 = inlined_call_operand.hbm [shape: f32[16,16], index: 4, kind: output, shape index: {}]  }
   0x1   :  { %v183_v0 = vld [vmem:[%s267_s3 + $0x8] sm:$0xff]   ;;  %170 = vmatprep.subr.bf16.mxu0 %v216_v1  ;;  %v184_v2 = vld [vmem:[%s267_s3] sm:$0xff]   ;;  %174 = vmatprep.mubr.msk.bf16.mxu0 %vm217_vm0, %v216_v1 }
   0x2   :  { %171 = vmatpush3.bf16.msra.mxu0 %v183_v0 }
   0x3   :  { %172 = vmatprep.subr.bf16.mxu0 %v216_v1 }
   0x4   :  { %11 = vsyncpa [#allocation5], 0  ;;  %v185_v3 = vld [vmem:[%s266_s2] sm:$0xff]   ;;  %vm44_vm1 = vcmask 261120   ;;  %v90_v4 = vstv %s264_s0  ;;  %v94_v6 = vstv %s265_s1  ;;  %vm133_vm3 = vcmask 130048   ;;  %s218_s0 = smov [#allocation4]  }
   0x5   :  { %s152_s1 = sshll.u32 %s218_s0, 4  ;;  %s153_s1 = int_to_ptr.vmem [resolvable:$true] %s152_s1 }
   0x6   :  { %173 = vmatpush3.bf16.msra.mxu0 %v184_v2  ;;  %s194_s2 = scalar_lea.vmem %s153_s1, 256  ;;  %p199_p1 = scmp.lt.s32.totalorder %s153_s1, %s153_s1 }
   0x7   :  { %p195_p0 = scmp.ne.s32.totalorder %s153_s1, %s194_s2  ;;  %p200_p2 = scmp.lt.s32.totalorder %s194_s2, %s194_s2 }
   0x9   :  { %175 = vmatmul.mubr.msk.bf16.vlgmr.msra.gmra.mxu0 %vm44_vm1, %v185_v3  ;;  %p201_p3 = por %p200_p2, %p199_p1 }
   0xb   :  { %p202_p4 = pnand %p201_p3, %p195_p0 }
  0xc9   :  { %v82_v5 = vpop.f32.mrf.mxu0 }
  0xca   :  { %v91_v7 = vmul.f32 %v90_v4, %v82_v5 }
  0xcb   :  { %v176_v8 = vpop.f32.mrf.mxu0 }
  0xcc   :  { %v95_v9 = vadd.f32 %v94_v6, %v91_v7 }
  0xcd   :  { %v85_v10 = vpop.f32.mrf.mxu0 }
  0xce   :  { %v101_v11 = vand.u32 2147483647, %v95_v9  ;;  %v92_v12 = vmul.f32 %v90_v4, %v85_v10  ;;  %v97_v27 = vmax.f32 %v95_v9, 0.0 }
  0xcf   :  { %v177_v13 = vpop.f32.mrf.mxu0 }
  0xd0   :  { %v103_v14 = vsub.f32 0.0, %v101_v11  ;;  %v96_v15 = vadd.f32 %v94_v6, %v92_v12  ;;  %v99_v33 = vsub.f32 0.0, %v97_v27 }
  0xd2   :  { %v105_v16 = vmul.f32 1.442695, %v103_v14  ;;  %v102_v17 = vand.u32 2147483647, %v96_v15  ;;  %v98_v34 = vmax.f32 %v96_v15, 0.0 }
  0xd4   :  { %186 = vpow2.f32 %v105_v16  ;;  %v104_v18 = vsub.f32 0.0, %v102_v17  ;;  %v100_v41 = vsub.f32 0.0, %v98_v34 }
  0xd6   :  { %v107_v19 = vmul.f32 1.442695, %v104_v18 }
  0xd8   :  { %188 = vpow2.f32 %v107_v19 }
  0xe1   :  { %v187_v20 = vpop.eup %186 }
  0xe2   :  { %v109_v21 = vadd.f32 1.0, %v187_v20  ;;  %v112_v24 = vmul.f32 -0.5, %v187_v20  ;;  %v115_v28 = vand.u32 2147483647, %v187_v20 }
  0xe4   :  { %190 = vlog2.f32 %v109_v21  ;;  %v113_v25 = vadd.f32 1.0, %v112_v24  ;;  %vm116_vm2 = vcmp.lt.f32.partialorder %v115_v28, 0.0004427343 }
  0xe5   :  { %v189_v22 = vpop.eup %188 }
  0xe6   :  { %v118_v23 = vadd.f32 1.0, %v189_v22  ;;  %v121_v26 = vmul.f32 -0.5, %v189_v22  ;;  %v114_v31 = vmul.f32 %v187_v20, %v113_v25  ;;  %v124_v35 = vand.u32 2147483647, %v189_v22 }
  0xe8   :  { %192 = vlog2.f32 %v118_v23  ;;  %v122_v32 = vadd.f32 1.0, %v121_v26  ;;  %vm125_vm4 = vcmp.lt.f32.partialorder %v124_v35, 0.0004427343 }
  0xea   :  { %v123_v40 = vmul.f32 %v189_v22, %v122_v32 }
  0xf1   :  { %v191_v29 = vpop.eup %190 }
  0xf2   :  { %v111_v30 = vmul.f32 0.6931472, %v191_v29 }
  0xf4   :  { %v117_v36 = vsel %vm116_vm2, %v114_v31, %v111_v30 }
  0xf5   :  { %v193_v37 = vpop.eup %192  ;;  %v127_v38 = vsub.f32 %v99_v33, %v117_v36 }
  0xf6   :  { %v120_v39 = vmul.f32 0.6931472, %v193_v37 }
  0xf7   :  { %134 = vst.msk [vmem:[#allocation4] sm:$0xff] %vm133_vm3, %v127_v38 }
  0xf8   :  { %v126_v42 = vsel %vm125_vm4, %v123_v40, %v120_v39 }
  0xf9   :  { %v128_v43 = vsub.f32 %v100_v41, %v126_v42 }
  0xfb   :  { %135 = vst.msk [vmem:[#allocation4 + $0x8] sm:$0xff] %vm133_vm3, %v128_v43 }
  0xfc   :  { %205 = shalt.err (!%p202_p4)
}
  0xfd   :  { %s219_s3 = smov 128   ;;  %s220_s25 = smov 8  }
  0xfe   :  { %158 = dma.vmem_to_hbm [thread:$0]  %s153_s1, 256, %s268_s4, [#allocation5], %s219_s3, %s219_s3, %s220_s25  }
  0xff   :  { %214 = dma.done.wait [#allocation5], 256  }
 0x100   :  { %215 = vsyncadd [#allocation5], 4294967040 }
 0x101   :  { %162 = vsyncpa [#allocation5], 1 }

</bundles_post_ra>
